<compile_context>
chip_gen: v5e
topology: v5e:2x2
jax: 0.10.0
libtpu: 0.0.40
codegen_flags: <defaults>
</compile_context>

<pallas_src>
import jax
import jax.numpy as jnp
from jax import lax
from jax.experimental import pallas as pl
from jax.experimental.pallas import tpu as pltpu

# ---- module hyper-parameters (from the PyTorch script) ----
batch_size = 1
embedding_size = 10
hidden_size = 8
input_size = 4          # vocab size
num_class = 4
num_layers = 2

dic = {'e': 0, 'h': 1, 'l': 2, 'o': 3}
x_data = ['h', 'e', 'l', 'l', 'o']
x_idx = [dic[c] for c in x_data]
seq_len = len(x_idx)


def rnn_kernel(idx_ref,    # SMEM (seq,) int32 token ids
               xtab_ref,   # VMEM (Vpad, 2H)  per-vocab addend [xproj | b1]
               wrec_ref,   # VMEM (2H, 2H)    wavefront block matrix
               wfcp_ref,   # VMEM (2H, C)     [[0], [W_fc^T]]
               bfc_ref,    # VMEM (1, C)
               out_ref):   # VMEM (seq_pad, C)
    seq = idx_ref.shape[0]            # static
    h2 = wrec_ref.shape[0]            # 2 * hidden_size
    hid = h2 // 2
    seq_pad = out_ref.shape[0]

    wrec = wrec_ref[...]              # loop-invariant recurrent weight

    # ---- per-token addend rows [xproj_t | b1]: gathered up front, off-chain ----
    rows = [xtab_ref[pl.ds(idx_ref[t], 1), :] for t in range(seq)]

    # ---- wavefront recurrence: state s = [h0[t] | h1[t-1]] ----
    lane = lax.broadcasted_iota(jnp.int32, (1, h2), 1)
    # step 0: previous state is all-zero -> z = 0; layer-1 half must stay 0
    # (true initial h1 is 0, not tanh(b1)).
    s = jnp.where(lane < hid, jnp.tanh(rows[0]), 0.0)          # [h0[0] | 0]

    hist = []                                                   # states after steps 1..seq
    for t in range(1, seq):                                     # 1 dot + 1 tanh per step
        z = jnp.dot(s, wrec, preferred_element_type=jnp.float32)
        s = jnp.tanh(z + rows[t])                               # [h0[t] | h1[t-1]]
        hist.append(s)
    # drain step (t == seq): produces h1[seq-1]; layer-0 half is junk/unused.
    # Reusing rows[seq-1] is safe: its layer-1 half is exactly b1.
    z = jnp.dot(s, wrec, preferred_element_type=jnp.float32)
    s = jnp.tanh(z + rows[seq - 1])                             # [junk | h1[seq-1]]
    hist.append(s)
    # hist[k] (k = 0..seq-1) holds h1[k] in its upper-lane half.

    # ---- epilogue: assemble hidden history from register values (no scratch) ----
    row_id = lax.broadcasted_iota(jnp.int32, (seq_pad, h2), 0)
    h_all = jnp.zeros((seq_pad, h2), jnp.float32)
    for k, s_k in enumerate(hist):                              # off the critical path
        h_all = jnp.where(row_id == k, s_k, h_all)

    # FC head: zero rows of wfcp mask out the layer-0 half of h_all.
    out_ref[...] = (jnp.dot(h_all, wfcp_ref[...],
                            preferred_element_type=jnp.float32) + bfc_ref[...])


def _rnn_model_forward(idx, params):
    """idx: (seq,) int token indices. Returns (seq*batch, num_class) float32."""
    (emb, w_ih0, w_hh0, b_ih0, b_hh0,
     w_ih1, w_hh1, b_ih1, b_hh1, w_fc, b_fc) = params

    f32 = jnp.float32
    H = hidden_size
    V = input_size
    # safety clamp (token id is used as a dynamic sublane offset in VMEM)
    idx = jnp.clip(jnp.asarray(idx, jnp.int32), 0, V - 1)
    seq = idx.shape[0]
    seq_pad = max(int(pl.cdiv(seq, 8) * 8), 8)       # sublane-friendly padding
    v_pad = max(int(pl.cdiv(V, 8) * 8), 8)

    # ---- fused / padded weight plumbing (runs once under jit) ----
    # Per-vocab addend table: [emb@W_ih0^T + b_ih0 + b_hh0 | b_ih1 + b_hh1]
    xproj = emb.astype(f32) @ w_ih0.T.astype(f32) + (b_ih0 + b_hh0).astype(f32)
    b1row = jnp.broadcast_to((b_ih1 + b_hh1).astype(f32), (V, H))
    xtab = jnp.zeros((v_pad, 2 * H), f32).at[:V].set(
        jnp.concatenate([xproj, b1row], axis=1))

    # Wavefront block matrix: s=[h0|h1] @ W -> [h0@Whh0^T | h0@Wih1^T + h1@Whh1^T]
    w_rec = jnp.zeros((2 * H, 2 * H), f32)
    w_rec = w_rec.at[:H, :H].set(w_hh0.T.astype(f32))
    w_rec = w_rec.at[:H, H:].set(w_ih1.T.astype(f32))
    w_rec = w_rec.at[H:, H:].set(w_hh1.T.astype(f32))

    wfc_pad = jnp.concatenate(
        [jnp.zeros((H, num_class), f32), w_fc.T.astype(f32)], axis=0)
    bfc = b_fc.reshape(1, num_class).astype(f32)

    vmem = pl.BlockSpec(memory_space=pltpu.MemorySpace.VMEM)
    smem = pl.BlockSpec(memory_space=pltpu.MemorySpace.SMEM)
    out = pl.pallas_call(
        rnn_kernel,
        out_shape=jax.ShapeDtypeStruct((seq_pad, num_class), jnp.float32),
        in_specs=[smem, vmem, vmem, vmem, vmem],
        out_specs=vmem,
    )(idx, xtab, w_rec, wfc_pad, bfc)
    # matches x.view(-1, num_class) in the PyTorch forward (batch_size == 1)
    return out[:seq].reshape(-1, num_class)


# Single compiled dispatch for plumbing + kernel + final slice.
rnn_model_forward = jax.jit(_rnn_model_forward)


def init_params(key):
    ks = jax.random.split(key, 11)
    bound = 1.0 / jnp.sqrt(hidden_size)
    u = lambda k, shape: jax.random.uniform(k, shape, jnp.float32, -bound, bound)
    emb = jax.random.normal(ks[0], (input_size, embedding_size), jnp.float32)
    w_ih0 = u(ks[1], (hidden_size, embedding_size))
    w_hh0 = u(ks[2], (hidden_size, hidden_size))
    b_ih0 = u(ks[3], (hidden_size,))
    b_hh0 = u(ks[4], (hidden_size,))
    w_ih1 = u(ks[5], (hidden_size, hidden_size))
    w_hh1 = u(ks[6], (hidden_size, hidden_size))
    b_ih1 = u(ks[7], (hidden_size,))
    b_hh1 = u(ks[8], (hidden_size,))
    w_fc = u(ks[9], (num_class, hidden_size))
    b_fc = u(ks[10], (num_class,))
    return (emb, w_ih0, w_hh0, b_ih0, b_hh0,
            w_ih1, w_hh1, b_ih1, b_hh1, w_fc, b_fc)


def reference_forward(idx, params):
    """Pure-JAX reference mirroring the PyTorch semantics exactly."""
    (emb, w_ih0, w_hh0, b_ih0, b_hh0,
     w_ih1, w_hh1, b_ih1, b_hh1, w_fc, b_fc) = params
    x = emb[idx]                              # (seq, emb)
    h0 = jnp.zeros((hidden_size,), jnp.float32)
    h1 = jnp.zeros((hidden_size,), jnp.float32)
    outs = []
    for t in range(x.shape[0]):
        h0 = jnp.tanh(x[t] @ w_ih0.T + b_ih0 + h0 @ w_hh0.T + b_hh0)
        h1 = jnp.tanh(h0 @ w_ih1.T + b_ih1 + h1 @ w_hh1.T + b_hh1)
        outs.append(h1 @ w_fc.T + b_fc)
    return jnp.stack(outs).reshape(-1, num_class)


if __name__ == "__main__":
    key = jax.random.PRNGKey(0)
    params = init_params(key)
    idx = jnp.array(x_idx, dtype=jnp.int32)   # "hello" -> [1, 0, 2, 2, 3]

    out = rnn_model_forward(idx, params)
    out = jax.block_until_ready(out)

    ref = reference_forward(idx, params)
    assert out.shape == (seq_len * batch_size, num_class), out.shape
    assert jnp.allclose(out, ref, atol=1e-5, rtol=1e-5), (out, ref)
    print("KERNEL_OK")
</pallas_src>

<mosaic_0001>
module attributes {stable_mosaic.version = 11 : i64} {
  func.func @rnn_kernel(%arg0: memref<5xi32, #tpu.memory_space<smem>>, %arg1: memref<8x16xf32, #tpu.memory_space<vmem>>, %arg2: memref<16x16xf32, #tpu.memory_space<vmem>>, %arg3: memref<16x4xf32, #tpu.memory_space<vmem>>, %arg4: memref<1x4xf32, #tpu.memory_space<vmem>>, %arg5: memref<8x4xf32, #tpu.memory_space<vmem>>) attributes {dimension_semantics = [], scalar_prefetch = 0 : i64, scratch_operands = 0 : i64, tpu.core_type = #tpu.core_type<tc>} {
    %c0 = arith.constant 0 : index
    %c0_0 = arith.constant 0 : index
    %0 = vector.load %arg2[%c0, %c0_0] : memref<16x16xf32, #tpu.memory_space<vmem>>, vector<16x16xf32>
    %c0_1 = arith.constant 0 : index
    %1 = memref.load %arg0[%c0_1] : memref<5xi32, #tpu.memory_space<smem>>
    %2 = arith.index_cast %1 : i32 to index
    %c0_2 = arith.constant 0 : index
    %3 = vector.load %arg1[%2, %c0_2] : memref<8x16xf32, #tpu.memory_space<vmem>>, vector<1x16xf32>
    %c1 = arith.constant 1 : index
    %4 = memref.load %arg0[%c1] : memref<5xi32, #tpu.memory_space<smem>>
    %5 = arith.index_cast %4 : i32 to index
    %c0_3 = arith.constant 0 : index
    %6 = vector.load %arg1[%5, %c0_3] : memref<8x16xf32, #tpu.memory_space<vmem>>, vector<1x16xf32>
    %c2 = arith.constant 2 : index
    %7 = memref.load %arg0[%c2] : memref<5xi32, #tpu.memory_space<smem>>
    %8 = arith.index_cast %7 : i32 to index
    %c0_4 = arith.constant 0 : index
    %9 = vector.load %arg1[%8, %c0_4] : memref<8x16xf32, #tpu.memory_space<vmem>>, vector<1x16xf32>
    %c3 = arith.constant 3 : index
    %10 = memref.load %arg0[%c3] : memref<5xi32, #tpu.memory_space<smem>>
    %11 = arith.index_cast %10 : i32 to index
    %c0_5 = arith.constant 0 : index
    %12 = vector.load %arg1[%11, %c0_5] : memref<8x16xf32, #tpu.memory_space<vmem>>, vector<1x16xf32>
    %c4 = arith.constant 4 : index
    %13 = memref.load %arg0[%c4] : memref<5xi32, #tpu.memory_space<smem>>
    %14 = arith.index_cast %13 : i32 to index
    %c0_6 = arith.constant 0 : index
    %15 = vector.load %arg1[%14, %c0_6] : memref<8x16xf32, #tpu.memory_space<vmem>>, vector<1x16xf32>
    %16 = tpu.iota {dimensions = array<i32: 1>} : vector<1x16xi32>
    %c8_i32 = arith.constant 8 : i32
    %17 = vector.broadcast %c8_i32 : i32 to vector<1x16xi32>
    %18 = arith.cmpi slt, %16, %17 : vector<1x16xi32>
    %19 = math.tanh %3 : vector<1x16xf32>
    %cst = arith.constant 0.000000e+00 : f32
    %20 = vector.broadcast %cst : f32 to vector<1x16xf32>
    %21 = arith.select %18, %19, %20 : vector<1x16xi1>, vector<1x16xf32>
    %cst_7 = arith.constant dense<0.000000e+00> : vector<1x16xf32>
    %22 = tpu.matmul %21, %0, %cst_7 {dimension_numbers = #tpu.dot_dimension_numbers<[1], [0], [0], [1], [0, 0, 1, 1], [], []>} : vector<1x16xf32>, vector<16x16xf32>, vector<1x16xf32> -> vector<1x16xf32>
    %23 = arith.addf %22, %6 : vector<1x16xf32>
    %24 = math.tanh %23 : vector<1x16xf32>
    %cst_8 = arith.constant dense<0.000000e+00> : vector<1x16xf32>
    %25 = tpu.matmul %24, %0, %cst_8 {dimension_numbers = #tpu.dot_dimension_numbers<[1], [0], [0], [1], [0, 0, 1, 1], [], []>} : vector<1x16xf32>, vector<16x16xf32>, vector<1x16xf32> -> vector<1x16xf32>
    %26 = arith.addf %25, %9 : vector<1x16xf32>
    %27 = math.tanh %26 : vector<1x16xf32>
    %cst_9 = arith.constant dense<0.000000e+00> : vector<1x16xf32>
    %28 = tpu.matmul %27, %0, %cst_9 {dimension_numbers = #tpu.dot_dimension_numbers<[1], [0], [0], [1], [0, 0, 1, 1], [], []>} : vector<1x16xf32>, vector<16x16xf32>, vector<1x16xf32> -> vector<1x16xf32>
    %29 = arith.addf %28, %12 : vector<1x16xf32>
    %30 = math.tanh %29 : vector<1x16xf32>
    %cst_10 = arith.constant dense<0.000000e+00> : vector<1x16xf32>
    %31 = tpu.matmul %30, %0, %cst_10 {dimension_numbers = #tpu.dot_dimension_numbers<[1], [0], [0], [1], [0, 0, 1, 1], [], []>} : vector<1x16xf32>, vector<16x16xf32>, vector<1x16xf32> -> vector<1x16xf32>
    %32 = arith.addf %31, %15 : vector<1x16xf32>
    %33 = math.tanh %32 : vector<1x16xf32>
    %cst_11 = arith.constant dense<0.000000e+00> : vector<1x16xf32>
    %34 = tpu.matmul %33, %0, %cst_11 {dimension_numbers = #tpu.dot_dimension_numbers<[1], [0], [0], [1], [0, 0, 1, 1], [], []>} : vector<1x16xf32>, vector<16x16xf32>, vector<1x16xf32> -> vector<1x16xf32>
    %35 = arith.addf %34, %15 : vector<1x16xf32>
    %36 = math.tanh %35 : vector<1x16xf32>
    %37 = tpu.iota {dimensions = array<i32: 0>} : vector<8x16xi32>
    %cst_12 = arith.constant 0.000000e+00 : f32
    %38 = vector.broadcast %cst_12 : f32 to vector<8x16xf32>
    %c0_i32 = arith.constant 0 : i32
    %39 = vector.broadcast %c0_i32 : i32 to vector<8x16xi32>
    %40 = arith.cmpi eq, %37, %39 : vector<8x16xi32>
    %41 = vector.shape_cast %24 : vector<1x16xf32> to vector<1x16xf32>
    %42 = vector.broadcast %41 : vector<1x16xf32> to vector<8x16xf32>
    %43 = arith.select %40, %42, %38 : vector<8x16xi1>, vector<8x16xf32>
    %c1_i32 = arith.constant 1 : i32
    %44 = vector.broadcast %c1_i32 : i32 to vector<8x16xi32>
    %45 = arith.cmpi eq, %37, %44 : vector<8x16xi32>
    %46 = vector.shape_cast %27 : vector<1x16xf32> to vector<1x16xf32>
    %47 = vector.broadcast %46 : vector<1x16xf32> to vector<8x16xf32>
    %48 = arith.select %45, %47, %43 : vector<8x16xi1>, vector<8x16xf32>
    %c2_i32 = arith.constant 2 : i32
    %49 = vector.broadcast %c2_i32 : i32 to vector<8x16xi32>
    %50 = arith.cmpi eq, %37, %49 : vector<8x16xi32>
    %51 = vector.shape_cast %30 : vector<1x16xf32> to vector<1x16xf32>
    %52 = vector.broadcast %51 : vector<1x16xf32> to vector<8x16xf32>
    %53 = arith.select %50, %52, %48 : vector<8x16xi1>, vector<8x16xf32>
    %c3_i32 = arith.constant 3 : i32
    %54 = vector.broadcast %c3_i32 : i32 to vector<8x16xi32>
    %55 = arith.cmpi eq, %37, %54 : vector<8x16xi32>
    %56 = vector.shape_cast %33 : vector<1x16xf32> to vector<1x16xf32>
    %57 = vector.broadcast %56 : vector<1x16xf32> to vector<8x16xf32>
    %58 = arith.select %55, %57, %53 : vector<8x16xi1>, vector<8x16xf32>
    %c4_i32 = arith.constant 4 : i32
    %59 = vector.broadcast %c4_i32 : i32 to vector<8x16xi32>
    %60 = arith.cmpi eq, %37, %59 : vector<8x16xi32>
    %61 = vector.shape_cast %36 : vector<1x16xf32> to vector<1x16xf32>
    %62 = vector.broadcast %61 : vector<1x16xf32> to vector<8x16xf32>
    %63 = arith.select %60, %62, %58 : vector<8x16xi1>, vector<8x16xf32>
    %c0_13 = arith.constant 0 : index
    %c0_14 = arith.constant 0 : index
    %64 = vector.load %arg3[%c0_13, %c0_14] : memref<16x4xf32, #tpu.memory_space<vmem>>, vector<16x4xf32>
    %cst_15 = arith.constant dense<0.000000e+00> : vector<8x4xf32>
    %65 = tpu.matmul %63, %64, %cst_15 {dimension_numbers = #tpu.dot_dimension_numbers<[1], [0], [0], [1], [0, 0, 1, 1], [], []>} : vector<8x16xf32>, vector<16x4xf32>, vector<8x4xf32> -> vector<8x4xf32>
    %c0_16 = arith.constant 0 : index
    %c0_17 = arith.constant 0 : index
    %66 = vector.load %arg4[%c0_16, %c0_17] : memref<1x4xf32, #tpu.memory_space<vmem>>, vector<1x4xf32>
    %67 = vector.broadcast %66 : vector<1x4xf32> to vector<8x4xf32>
    %68 = arith.addf %65, %67 : vector<8x4xf32>
    %c0_18 = arith.constant 0 : index
    %c0_19 = arith.constant 0 : index
    %69 = vector.load %arg5[%c0_18, %c0_19] : memref<8x4xf32, #tpu.memory_space<vmem>>, vector<8x4xf32>
    tpu.vector_store %arg5[%c0_18, %c0_19], %68 {strides = array<i32>} : memref<8x4xf32, #tpu.memory_space<vmem>>, vector<8x4xf32>,
    return
  }
}

</mosaic_0001>

<bundles_post_ra>
// kernel: _rnn_model_forward.1
= control target key start
LH: loop header
LB: loop body
LE: loop exit
PB: predicated region body
PF: predicated region fallthrough
CT: control target
= control target key end

     0   :  { %10 = vsyncpa [#allocation3], 0  ;;  %s272_s21 = smov [#allocation2]   ;;  %s345_s0 = inlined_call_operand.vmem [shape: s32[5], index: 0, kind: input, shape index: {}]   ;;  %s346_s1 = inlined_call_operand.vmem [shape: f32[8,16], index: 1, kind: input, shape index: {}]   ;;  %s347_s2 = inlined_call_operand.vmem [shape: f32[16,16], index: 2, kind: input, shape index: {}]   ;;  %s348_s3 = inlined_call_operand.vmem [shape: f32[16,4], index: 3, kind: input, shape index: {}]   ;;  %s349_s4 = inlined_call_operand.vmem [shape: f32[1,4], index: 4, kind: input, shape index: {}]   ;;  %s350_s5 = inlined_call_operand.vmem [shape: f32[8,4], index: 5, kind: output, shape index: {}]  }
   0x1   :  { %s16_s20 = sshll.u32 %s345_s0, 4  ;;  %s17_s20 = int_to_ptr.vmem [resolvable:$true] %s16_s20 }
   0x2   :  { %19 = dma.vmem_to_smem %s17_s20, 16, %s272_s21, [#allocation3]  }
   0x3   :  { %270 = dma.done.wait [#allocation3], 16  }
   0x4   :  { %271 = vsyncadd [#allocation3], 4294967280 }
   0x5   :  { %32 = sfence }
   0x6   :  { %v34_v0 = vld [vmem:[%s347_s2 + $0x8] sm:$0xff]  ;;  %v33_v1 = vld [vmem:[%s347_s2] sm:$0xff]  ;;  %s35_s26 = sld [smem:[#allocation2]]  ;;  %v50_v2 = vlaneseq  ;;  %vm55_vm1 = vcmask 130048   ;;  %vm222_vm7 = vcmask 31744  }
   0x7   :  { %73 = vmatpush.msra.mxu0 %v34_v0  ;;  %97 = vmatpush.msra.mxu1 %v34_v0  ;;  %s234_s2 = sld [smem:[#allocation2 + $0x1]]  ;;  %v194_v32 = vld [vmem:[%s348_s3 + $0x8] sm:$0xff]  ;;  %v193_v33 = vld [vmem:[%s348_s3] sm:$0xff] }
   0x8   :  { %121 = vmatpush.msra.mxu2 %v34_v0  ;;  %145 = vmatpush.msra.mxu3 %v34_v0  ;;  %v51_v4 = vand.u32 127, %v50_v2  ;;  %v177_v10 = vshrl.u32 %v50_v2, 7  ;;  %s235_s7 = sld [smem:[#allocation2 + $0x2]]  ;;  %v245_v39 = vld [vmem:[%s349_s4] ss:$0 sm:$0xff] }
   0x9   :  { %74 = vmatpush.msra.mxu0 %v33_v1  ;;  %98 = vmatpush.msra.mxu1 %v33_v1  ;;  %s236_s11 = sld [smem:[#allocation2 + $0x3]] }
   0xa   :  { %122 = vmatpush.msra.mxu2 %v33_v1  ;;  %146 = vmatpush.msra.mxu3 %v33_v1  ;;  %vm52_vm0 = vcmp.lt.s32.totalorder %v51_v4, 8  ;;  %vm178_vm2 = vcmp.eq.s32.totalorder %v177_v10, 0  ;;  %vm181_vm3 = vcmp.eq.s32.totalorder %v177_v10, 1  ;;  %vm184_vm4 = vcmp.eq.s32.totalorder %v177_v10, 2  ;;  %s237_s15 = sld [smem:[#allocation2 + $0x4]] }
   0xb   :  { %169 = vmatpush.msrb.mxu0 %v34_v0  ;;  %vm187_vm5 = vcmp.eq.s32.totalorder %v177_v10, 3  ;;  %216 = vmatpush.msrb.mxu1 %v194_v32  ;;  %vm190_vm6 = vcmp.eq.s32.totalorder %v177_v10, 4 }
   0xc   :  { %s36_s28 = scalar_lea.vmem %s346_s1, %s35_s26 }
   0xd   :  { %v37_v3 = vld [vmem:[%s36_s28] sm:$0x1]  ;;  %170 = vmatpush.msrb.mxu0 %v33_v1  ;;  %s39_s6 = scalar_lea.vmem %s346_s1, %s234_s2  ;;  %217 = vmatpush.msrb.mxu1 %v193_v33 }
   0xe   :  { %246 = vtanh.f32 %v37_v3  ;;  %v40_v7 = vld [vmem:[%s39_s6] sm:$0x1]  ;;  %s42_s10 = scalar_lea.vmem %s346_s1, %s235_s7 }
   0xf   :  { %v43_v14 = vld [vmem:[%s42_s10] sm:$0x1]  ;;  %s45_s14 = scalar_lea.vmem %s346_s1, %s236_s11 }
  0x10   :  { %v46_v20 = vld [vmem:[%s45_s14] sm:$0x1]  ;;  %s48_s18 = scalar_lea.vmem %s346_s1, %s237_s15 }
  0x11   :  { %v49_v26 = vld [vmem:[%s48_s18] sm:$0x1] }
  0x14   :  { %v247_v5 = vpop.eup %246 }
  0x15   :  { %v54_v6 = vsel %vm52_vm0, %v247_v5, 0.0 }
  0x16   :  { %238 = vmatmul.msk.f32.vlgmr.msra.gmra.mxu0 %vm55_vm1, %v54_v6 }
  0x93   :  { %v76_v8 = vpop.f32.mrf.mxu0 }
  0x94   :  { %v77_v9 = vadd.f32 %v76_v8, %v40_v7 }
  0x96   :  { %248 = vtanh.f32 %v77_v9 }
  0x9c   :  { %v249_v11 = vpop.eup %248 }
  0x9d   :  { %v179_v12 = vperm.slane %v249_v11, 0  ;;  %239 = vmatmul.msk.f32.vlgmr.msra.gmra.mxu1 %vm55_vm1, %v249_v11 }
  0x9f   :  { %v180_v13 = vsel %vm178_vm2, %v179_v12, 0.0 }
 0x11a   :  { %v100_v15 = vpop.f32.mrf.mxu1 }
 0x11b   :  { %v101_v16 = vadd.f32 %v100_v15, %v43_v14 }
 0x11d   :  { %250 = vtanh.f32 %v101_v16 }
 0x123   :  { %v251_v17 = vpop.eup %250 }
 0x124   :  { %v182_v18 = vperm.slane %v251_v17, 0  ;;  %240 = vmatmul.msk.f32.vlgmr.msra.gmra.mxu2 %vm55_vm1, %v251_v17 }
 0x126   :  { %v183_v19 = vsel %vm181_vm3, %v182_v18, %v180_v13 }
 0x1a7   :  { %v124_v21 = vpop.f32.mrf.mxu2 }
 0x1a8   :  { %v125_v22 = vadd.f32 %v124_v21, %v46_v20 }
 0x1aa   :  { %252 = vtanh.f32 %v125_v22 }
 0x1b0   :  { %v253_v23 = vpop.eup %252 }
 0x1b1   :  { %v185_v24 = vperm.slane %v253_v23, 0  ;;  %241 = vmatmul.msk.f32.vlgmr.msra.gmra.mxu3 %vm55_vm1, %v253_v23 }
 0x1b3   :  { %v186_v25 = vsel %vm184_vm4, %v185_v24, %v183_v19 }
 0x234   :  { %v148_v27 = vpop.f32.mrf.mxu3 }
 0x235   :  { %v149_v28 = vadd.f32 %v148_v27, %v49_v26 }
 0x237   :  { %254 = vtanh.f32 %v149_v28 }
 0x23d   :  { %v255_v29 = vpop.eup %254 }
 0x23e   :  { %v188_v30 = vperm.slane %v255_v29, 0  ;;  %242 = vmatmul.msk.f32.vlgmr.msrb.gmra.mxu0 %vm55_vm1, %v255_v29 }
 0x240   :  { %v189_v31 = vsel %vm187_vm5, %v188_v30, %v186_v25 }
 0x2bb   :  { %v172_v34 = vpop.f32.mrf.mxu0 }
 0x2bc   :  { %v173_v35 = vadd.f32 %v172_v34, %v49_v26 }
 0x2be   :  { %256 = vtanh.f32 %v173_v35 }
 0x2c4   :  { %v257_v36 = vpop.eup %256 }
 0x2c5   :  { %v191_v37 = vperm.slane %v257_v36, 0 }
 0x2c7   :  { %v192_v38 = vsel %vm190_vm6, %v191_v37, %v189_v31 }
 0x2c8   :  { %243 = vmatmul.msk.f32.vlgmr.msrb.gmra.mxu1 %vm55_vm1, %v192_v38 }
 0x345   :  { %v219_v40 = vpop.f32.mrf.mxu1 }
 0x346   :  { %v220_v41 = vadd.f32 %v245_v39, %v219_v40 }
 0x348   :  { %223 = vst.msk [vmem:[%s350_s5] sm:$0xff] %vm222_vm7, %v220_v41 }
 0x349   :  { %228 = vsyncpa [#allocation3], 1 }

</bundles_post_ra>
